<compile_context>
chip_gen: v7x
topology: tpu7x:2x2x1
jax: 0.10.0
libtpu: 0.0.40
codegen_flags: <defaults>
</compile_context>

<pallas_src>
import functools

import jax
import jax.numpy as jnp
from jax.experimental import pallas as pl
from jax.experimental.pallas import tpu as pltpu


def _linear_clamp_small_kernel(x_ref, w_ref, b_ref, o_ref, *, min_value, max_value):
    # Gridless tiny-batch path. x_ref: (M, K), w_ref: (K, N), b_ref: (1, N).
    x = x_ref[...]
    w = w_ref[...]
    b = b_ref[...]
    K = w.shape[0]
    y = jnp.broadcast_to(b, (x.shape[0], w.shape[1]))
    for k in range(K):  # K == 3: unrolled VPU FMAs, no MXU
        y = y + x[:, k:k + 1] * w[k:k + 1, :]
    y = jnp.minimum(jnp.maximum(y, min_value), max_value)
    o_ref[...] = y


def _linear_clamp_t_kernel(w_ref, b_ref, xT_ref, oT_ref, *, min_value, max_value):
    # Lane-dense transposed path.
    # w_ref: (N, K) f32, b_ref: (N, 1) f32, xT_ref: (K, tc) f32, oT_ref: (N, tc) f32
    w = w_ref[...]
    b = b_ref[...]
    x = xT_ref[...]
    N, K = w.shape
    tc = x.shape[1]
    # Bias splat along lanes, then K=3 broadcast-FMAs on the VPU.
    y = jnp.broadcast_to(b, (N, tc))
    for k in range(K):
        y = y + w[:, k:k + 1] * x[k:k + 1, :]
    y = jnp.minimum(jnp.maximum(y, min_value), max_value)
    oT_ref[...] = y  # (8, tc): unmasked, lane-dense stores


def _round_up(x, m):
    return ((x + m - 1) // m) * m


def linear_clamp(x, w, b, min_value, max_value, *, tc=32768):
    """x: (M, K) f32, w: (N, K) f32 (PyTorch layout), b: (N,) f32 -> (M, N) f32."""
    M, K = x.shape
    N, K2 = w.shape
    assert K == K2 and b.shape == (N,)

    min_value = float(min_value)
    max_value = float(max_value)

    if M <= 8:
        # Genuinely tiny batch (spec shape): overhead-bound; single full block.
        kernel = functools.partial(
            _linear_clamp_small_kernel, min_value=min_value, max_value=max_value)
        return pl.pallas_call(
            kernel,
            out_shape=jax.ShapeDtypeStruct((M, N), jnp.float32),
            in_specs=[
                pl.BlockSpec((M, K), lambda: (0, 0)),
                pl.BlockSpec((K, N), lambda: (0, 0)),
                pl.BlockSpec((1, N), lambda: (0, 0)),
            ],
            out_specs=pl.BlockSpec((M, N), lambda: (0, 0)),
        )(x, w.T, b.reshape(1, N))

    # Lane-dense tiled path: x as (K, M), y as (N, M); tile the lane (M) axis.
    xT = x.T                      # (K, M)  -- layout plumbing, tiny for K=3
    b2 = b.reshape(N, 1)          # (N, 1)

    tc_eff = min(int(tc), _round_up(M, 128))
    tc_eff = _round_up(tc_eff, 128)
    grid = (pl.cdiv(M, tc_eff),)  # ragged tail block is masked by Pallas

    kernel = functools.partial(
        _linear_clamp_t_kernel, min_value=min_value, max_value=max_value)

    cost = pl.CostEstimate(
        flops=2 * M * K * N,
        transcendentals=0,
        bytes_accessed=4 * (M * K + N * K + N + M * N),
    )

    yT = pl.pallas_call(
        kernel,
        out_shape=jax.ShapeDtypeStruct((N, M), jnp.float32),
        grid=grid,
        in_specs=[
            pl.BlockSpec((N, K), lambda i: (0, 0)),       # w resident
            pl.BlockSpec((N, 1), lambda i: (0, 0)),       # b resident
            pl.BlockSpec((K, tc_eff), lambda i: (0, i)),  # x columns streamed
        ],
        out_specs=pl.BlockSpec((N, tc_eff), lambda i: (0, i)),
        compiler_params=pltpu.CompilerParams(
            dimension_semantics=("parallel",)),
        cost_estimate=cost,
    )(w, b2, xT)

    return yT.T                   # back to (M, N) to match module semantics


if __name__ == "__main__":
    key = jax.random.PRNGKey(0)
    k_x, k_w, k_b, k_x2, k_x3 = jax.random.split(key, 5)

    # Module shapes: Linear(3, 8); spec input x1 is (1, 3).
    in_features, out_features = 3, 8

    # Deterministic PyTorch-style uniform(-1/sqrt(fan_in), +) parameter init.
    bound = 1.0 / float(jnp.sqrt(jnp.float32(in_features)))
    w = jax.random.uniform(k_w, (out_features, in_features),
                           minval=-bound, maxval=bound, dtype=jnp.float32)
    b = jax.random.uniform(k_b, (out_features,),
                           minval=-bound, maxval=bound, dtype=jnp.float32)

    # Constructor args (min_value, max_value) — chosen deterministically.
    min_value = -0.5
    max_value = 0.5

    def ref_fn(xx):
        return jnp.minimum(jnp.maximum(xx @ w.T + b, min_value), max_value)

    # 1) Spec shape (batch=1): gridless tiny path.
    x1 = jax.random.normal(k_x, (1, in_features), dtype=jnp.float32)
    out = jax.block_until_ready(linear_clamp(x1, w, b, min_value, max_value))
    assert out.shape == (1, out_features)
    assert jnp.allclose(out, ref_fn(x1), atol=1e-5, rtol=1e-5)

    # 2) Ragged batch with a small tile: exercises the cdiv grid (4 steps)
    #    and the masked tail block of the lane-dense transposed path.
    x_big = jax.random.normal(k_x2, (1000, in_features), dtype=jnp.float32)
    out_big = jax.block_until_ready(
        linear_clamp(x_big, w, b, min_value, max_value, tc=256))
    assert out_big.shape == (1000, out_features)
    assert jnp.allclose(out_big, ref_fn(x_big), atol=1e-5, rtol=1e-5)

    # 3) Default tile: single-step lane-dense grid.
    x_mid = jax.random.normal(k_x3, (1024, in_features), dtype=jnp.float32)
    out_mid = jax.block_until_ready(linear_clamp(x_mid, w, b, min_value, max_value))
    assert out_mid.shape == (1024, out_features)
    assert jnp.allclose(out_mid, ref_fn(x_mid), atol=1e-5, rtol=1e-5)

    print("KERNEL_OK")
</pallas_src>

<mosaic_0001>
module attributes {stable_mosaic.version = 11 : i64} {
  func.func @_linear_clamp_small_kernel(%arg0: memref<1x3xf32, #tpu.memory_space<vmem>>, %arg1: memref<3x8xf32, #tpu.memory_space<vmem>>, %arg2: memref<1x8xf32, #tpu.memory_space<vmem>>, %arg3: memref<1x8xf32, #tpu.memory_space<vmem>>) attributes {dimension_semantics = [], scalar_prefetch = 0 : i64, scratch_operands = 0 : i64, tpu.core_type = #tpu.core_type<tc>} {
    %c0 = arith.constant 0 : index
    %c0_0 = arith.constant 0 : index
    %0 = vector.load %arg0[%c0, %c0_0] : memref<1x3xf32, #tpu.memory_space<vmem>>, vector<1x3xf32>
    %c0_1 = arith.constant 0 : index
    %c0_2 = arith.constant 0 : index
    %1 = vector.load %arg1[%c0_1, %c0_2] : memref<3x8xf32, #tpu.memory_space<vmem>>, vector<3x8xf32>
    %c0_3 = arith.constant 0 : index
    %c0_4 = arith.constant 0 : index
    %2 = vector.load %arg2[%c0_3, %c0_4] : memref<1x8xf32, #tpu.memory_space<vmem>>, vector<1x8xf32>
    %3 = vector.extract_strided_slice %0 {offsets = [0, 0], sizes = [1, 1], strides = [1, 1]} : vector<1x3xf32> to vector<1x1xf32>
    %4 = vector.extract_strided_slice %1 {offsets = [0, 0], sizes = [1, 8], strides = [1, 1]} : vector<3x8xf32> to vector<1x8xf32>
    %5 = vector.broadcast %3 : vector<1x1xf32> to vector<1x8xf32>
    %6 = arith.mulf %5, %4 : vector<1x8xf32>
    %7 = arith.addf %2, %6 : vector<1x8xf32>
    %8 = vector.extract_strided_slice %0 {offsets = [0, 1], sizes = [1, 1], strides = [1, 1]} : vector<1x3xf32> to vector<1x1xf32>
    %9 = vector.extract_strided_slice %1 {offsets = [1, 0], sizes = [1, 8], strides = [1, 1]} : vector<3x8xf32> to vector<1x8xf32>
    %10 = vector.broadcast %8 : vector<1x1xf32> to vector<1x8xf32>
    %11 = arith.mulf %10, %9 : vector<1x8xf32>
    %12 = arith.addf %7, %11 : vector<1x8xf32>
    %13 = vector.extract_strided_slice %0 {offsets = [0, 2], sizes = [1, 1], strides = [1, 1]} : vector<1x3xf32> to vector<1x1xf32>
    %14 = vector.extract_strided_slice %1 {offsets = [2, 0], sizes = [1, 8], strides = [1, 1]} : vector<3x8xf32> to vector<1x8xf32>
    %15 = vector.broadcast %13 : vector<1x1xf32> to vector<1x8xf32>
    %16 = arith.mulf %15, %14 : vector<1x8xf32>
    %17 = arith.addf %12, %16 : vector<1x8xf32>
    %cst = arith.constant -5.000000e-01 : f32
    %18 = vector.broadcast %cst : f32 to vector<1x8xf32>
    %19 = arith.maximumf %17, %18 : vector<1x8xf32>
    %cst_5 = arith.constant 5.000000e-01 : f32
    %20 = vector.broadcast %cst_5 : f32 to vector<1x8xf32>
    %21 = arith.minimumf %19, %20 : vector<1x8xf32>
    %c0_6 = arith.constant 0 : index
    %c0_7 = arith.constant 0 : index
    %22 = vector.load %arg3[%c0_6, %c0_7] : memref<1x8xf32, #tpu.memory_space<vmem>>, vector<1x8xf32>
    tpu.vector_store %arg3[%c0_6, %c0_7], %21 {strides = array<i32>} : memref<1x8xf32, #tpu.memory_space<vmem>>, vector<1x8xf32>,
    return
  }
}

</mosaic_0001>

<bundles_post_ra>
// kernel: tpu_custom_call.1
= control target key start
LH: loop header
LB: loop body
LE: loop exit
PB: predicated region body
PF: predicated region fallthrough
CT: control target
= control target key end

     0   :  { %8 = vsyncpa [#allocation3], 0  ;;  %s276_s0 = inlined_call_operand.hbm [shape: f32[1,3], index: 0, kind: input, shape index: {}]   ;;  %s277_s1 = inlined_call_operand.hbm [shape: f32[3,8], index: 1, kind: input, shape index: {}]   ;;  %s278_s2 = inlined_call_operand.vmem [shape: f32[1,8], index: 2, kind: input, shape index: {}]   ;;  %s279_s3 = inlined_call_operand.hbm [shape: f32[1,8], index: 3, kind: output, shape index: {}]  }
   0x1   :  { %9 = vsyncpa [#allocation6], 0 }
   0x2   :  { %10 = vsyncpa [#allocation4], 0  ;;  %s210_s12 = smov [#allocation2]   ;;  %s211_s14 = smov [#allocation5]  }
   0x3   :  { %s17_s13 = sshll.u32 %s210_s12, 4  ;;  %s27_s15 = sshll.u32 %s211_s14, 4  ;;  %s18_s13 = int_to_ptr.vmem [resolvable:$true] %s17_s13  ;;  %s28_s15 = int_to_ptr.vmem [resolvable:$true] %s27_s15 }
   0x4   :  { %s138_s18 = scalar_lea.hbm %s276_s0, 16 }
   0x5   :  { %p139_p0 = scmp.ne.s32.totalorder %s276_s0, %s138_s18  ;;  %p142_p1 = scmp.lt.u32.totalorder %s138_s18, %s276_s0 }
   0x7   :  { %p144_p2 = pnand %p142_p1, %p139_p0 }
   0x9   :  { %147 = shalt.err (!%p144_p2)
}
   0xa   :  { %s148_s23 = scalar_lea.vmem %s18_s13, 16  ;;  %s152_s24 = scalar_lea.vmem %s18_s13, 32 }
   0xb   :  { %p149_p3 = scmp.ne.s32.totalorder %s18_s13, %s148_s23  ;;  %p153_p4 = scmp.lt.s32.totalorder %s18_s13, %s18_s13 }
   0xc   :  { %p154_p5 = scmp.lt.s32.totalorder %s152_s24, %s148_s23 }
   0xe   :  { %p155_p6 = por %p154_p5, %p153_p4 }
  0x10   :  { %p156_p7 = pnand %p155_p6, %p149_p3 }
  0x12   :  { %159 = shalt.err (!%p156_p7)
}
  0x13   :  { %20 = dma.hbm_to_vmem [thread:$0]  %s276_s0, 16, %s18_s13, [#allocation3]  }
  0x14   :  { %s160_s29 = scalar_lea.hbm %s277_s1, 64 }
  0x15   :  { %p161_p8 = scmp.ne.s32.totalorder %s277_s1, %s160_s29  ;;  %p164_p9 = scmp.lt.u32.totalorder %s160_s29, %s277_s1 }
  0x17   :  { %p166_p10 = pnand %p164_p9, %p161_p8 }
  0x19   :  { %169 = shalt.err (!%p166_p10)
}
  0x1a   :  { %s170_s7 = scalar_lea.vmem %s28_s15, 64  ;;  %p175_p12 = scmp.lt.s32.totalorder %s28_s15, %s28_s15 }
  0x1b   :  { %p171_p11 = scmp.ne.s32.totalorder %s28_s15, %s170_s7  ;;  %p176_p13 = scmp.lt.s32.totalorder %s170_s7, %s170_s7 }
  0x1d   :  { %p177_p0 = por %p176_p13, %p175_p12 }
  0x1f   :  { %p178_p1 = pnand %p177_p0, %p171_p11 }
  0x21   :  { %181 = shalt.err (!%p178_p1)
}
  0x22   :  { %30 = dma.hbm_to_vmem [thread:$0]  %s277_s1, 64, %s28_s15, [#allocation6]  }
  0x23   :  { %204 = dma.done.wait [#allocation3], 16  }
  0x24   :  { %205 = vsyncadd [#allocation3], 4294967280 }
  0x25   :  { %206 = dma.done.wait [#allocation6], 64  }
  0x26   :  { %207 = vsyncadd [#allocation6], 4294967232  ;;  %v212_v0 = vmov 1   ;;  %v213_v1 = vmov 0   ;;  %v39_v2 = vld [vmem:[#allocation2] sm:$0x1]  ;;  %v47_v4 = vlaneseq }
  0x27   :  { %135 = vset.pattern.permute.xlu0 %v212_v0  ;;  %137 = vset.pattern.permute.xlu1 %v213_v1  ;;  %v214_v3 = vmov 2   ;;  %v215_v6 = vmov 1966171168   ;;  %v40_v10 = vld [vmem:[#allocation5] sm:$0x7]  ;;  %s216_s10 = smov [#allocation7]  }
  0x28   :  { %54 = vperm.xlu0 %135, %v39_v2   ;;  %44 = vperm.xlu1 %137, %v39_v2   ;;  %v48_v5 = vshrl.u32 %v47_v4, 7  ;;  %v64_v7 = vunpack.c.l.s4 %v215_v6  ;;  %v41_v22 = vld [vmem:[%s278_s2] sm:$0x1]  ;;  %s117_s11 = sshll.u32 %s216_s10, 4  ;;  %vm109_vm0 = vcmask 57344   ;;  %s118_s11 = int_to_ptr.vmem [resolvable:$true] %s117_s11 }
  0x29   :  { %s182_s12 = scalar_lea.vmem %s118_s11, 16  ;;  %s186_s13 = scalar_lea.vmem %s118_s11, 32 }
  0x2a   :  { %v49_v8 = vsub.s32 0, %v48_v5  ;;  %v65_v9 = vunpack.c.0.s8 %v64_v7  ;;  %p183_p2 = scmp.ne.s32.totalorder %s118_s11, %s182_s12  ;;  %p187_p3 = scmp.lt.s32.totalorder %s118_s11, %s118_s11 }
  0x2b   :  { %p188_p4 = scmp.lt.s32.totalorder %s186_s13, %s182_s12 }
  0x2c   :  { %136 = vset.pattern.permute.xlu0 %v214_v3  ;;  %v68_v13 = vsub.s32 %v65_v9, %v48_v5 }
  0x2d   :  { %81 = vperm.xlu0 %136, %v39_v2   ;;  %p189_p5 = por %p188_p4, %p187_p3 }
  0x2f   :  { %p190_p6 = pnand %p189_p5, %p183_p2 }
  0xa7   :  { %v55_v11 = vpop.permute.xlu0 %54  ;;  %v45_v12 = vpop.permute.xlu1 %44 }
  0xa8   :  { %v60_v14 = vrot.slane %v55_v11, %v49_v8  ;;  %v50_v15 = vrot.slane %v45_v12, %v49_v8 }
  0xaa   :  { %v61_v16 = vmul.f32 %v60_v14, %v40_v10  ;;  %v51_v19 = vmul.f32 %v50_v15, %v40_v10 }
  0xac   :  { %v69_v17 = vrot.slane %v61_v16, %v68_v13  ;;  %v82_v18 = vpop.permute.xlu0 %81  ;;  %v52_v25 = vadd.f32 %v51_v19, %v41_v22 }
  0xad   :  { %v87_v20 = vrot.slane %v82_v18, %v49_v8 }
  0xae   :  { %v70_v21 = vcombine.high %v69_v17, %v69_v17 }
  0xaf   :  { %v88_v23 = vmul.f32 %v87_v20, %v40_v10 }
  0xb0   :  { %v77_v24 = vrot.slane %v70_v21, %v68_v13 }
  0xb1   :  { %v96_v26 = vrot.slane %v88_v23, %v68_v13 }
  0xb2   :  { %v79_v28 = vadd.f32 %v77_v24, %v52_v25 }
  0xb3   :  { %v103_v27 = vrot.slane %v96_v26, %v68_v13 }
  0xb5   :  { %v104_v29 = vcombine.high %v103_v27, %v103_v27 }
  0xb7   :  { %v106_v30 = vadd.f32 %v104_v29, %v79_v28 }
  0xb9   :  { %v127_v31 = vclamps-f32 %v106_v30, 0.5 }
  0xbb   :  { %110 = vst.msk [vmem:[#allocation7] sm:$0x1] %vm109_vm0, %v127_v31 }
  0xbc   :  { %193 = shalt.err (!%p190_p6)
}
  0xbd   :  { %s194_s15 = scalar_lea.hbm %s279_s3, 16 }
  0xbe   :  { %p195_p7 = scmp.ne.s32.totalorder %s279_s3, %s194_s15  ;;  %p198_p8 = scmp.lt.u32.totalorder %s194_s15, %s279_s3 }
  0xc0   :  { %p200_p9 = pnand %p198_p8, %p195_p7 }
  0xc2   :  { %203 = shalt.err (!%p200_p9)
}
  0xc3   :  { %120 = dma.vmem_to_hbm [thread:$0]  %s118_s11, 16, %s279_s3, [#allocation4]  }
  0xc4   :  { %208 = dma.done.wait [#allocation4], 16  }
  0xc5   :  { %209 = vsyncadd [#allocation4], 4294967280 }
  0xc6   :  { %124 = vsyncpa [#allocation3], 1 }
  0xc7   :  { %125 = vsyncpa [#allocation6], 1 }
  0xc8   :  { %126 = vsyncpa [#allocation4], 1 }

</bundles_post_ra>
